<compile_context>
chip_gen: v5e
topology: v5e:2x2
jax: 0.10.0
libtpu: 0.0.40
codegen_flags: <defaults>
</compile_context>

<pallas_src>
import jax
import jax.numpy as jnp
from jax import lax
from jax.experimental import pallas as pl
from jax.experimental.pallas import tpu as pltpu


_LANE = 128                      # f32 lane width; batch tiles are multiples of this
_MIN_GRID = 4                    # aim for >= 4 'parallel' steps (v7x: 2 TensorCores)
_VMEM_BUDGET = 40 * (1 << 20)    # planning budget for pipelined buffers
_VMEM_LIMIT_BYTES = 48 * (1 << 20)   # explicit scoped-VMEM limit (safe on v5e/v6e/v7x)


def _round_up(x, m):
    return ((x + m - 1) // m) * m


def _cdiv(a, b):
    return (a + b - 1) // b


def _vmem_bytes_per_row(feat_dims, hidden_max, features_major):
    """Approximate pipelined-VMEM bytes per batch row (inputs + output + temps)."""
    if features_major:
        in_rows = sum(_round_up(f, 8) for f in feat_dims)   # sublane-padded features
    else:
        in_rows = len(feat_dims) * _LANE                    # lane-padded to 128
    in_buf = 2 * in_rows * 4                                # double-buffered inputs
    out_buf = 2 * 8 * 4                                     # (1, tile) block, 8 sublanes
    act = 4 * hidden_max * 4                                # activation temps headroom
    return in_buf + out_buf + act


def _plan_tiles(batch, batch_tile, feat_dims, hidden_max, features_major):
    """Pick (tile, grid, padded) for the batch axis."""
    tile = max(_LANE, _round_up(min(batch_tile, batch), _LANE))
    # Cap the tile so the pipelined buffers fit the VMEM budget.
    per_row = _vmem_bytes_per_row(feat_dims, hidden_max, features_major)
    tile_cap = max(_LANE, (_VMEM_BUDGET // per_row) // _LANE * _LANE)
    tile = min(tile, tile_cap)
    # v7x has 2 TensorCores: when there is enough work, keep >= _MIN_GRID
    # 'parallel' grid steps so the batch axis shards evenly across cores
    # (harmless on v5e/v6e, which have a single TC).
    if batch >= _MIN_GRID * _LANE and _cdiv(batch, tile) < _MIN_GRID:
        tile = max(_LANE, (batch // _MIN_GRID) // _LANE * _LANE)
    grid = _cdiv(batch, tile)
    return tile, grid, grid * tile


def make_termination_mlp_kernel(n_layers, features_major):
    """Pallas kernel for the TerminationFn MLP, evaluated transposed.

    Ref order:
      (states, actions, next_states,
       w0s_t, w0a_t, w0n_t, b0_t,               # layer 0, W0 split along rows
       w1_t, b1_t, ..., w_{L-1}_t, b_{L-1}_t,
       out)
    with w*_t: (f_out, f_in), b*_t: (f_out, 1).
    Activations live as (features, batch_tile): batch on the lane axis.
    Hidden activations: relu.  Last activation: sigmoid (TerminationFn).
    """
    nt_dims = (((1,), (1,)), ((), ()))   # contract the trailing (feature) axes

    def kernel(*refs):
        s_ref, a_ref, n_ref = refs[0], refs[1], refs[2]
        o_ref = refs[-1]
        p = refs[3:-1]

        # Upcast in-register (inputs may arrive as bf16 to halve HBM read traffic);
        # all accumulation stays f32.
        s = s_ref[...].astype(jnp.float32)
        a = a_ref[...].astype(jnp.float32)
        n = n_ref[...].astype(jnp.float32)

        # Layer 0 with the concat fused:  h = W0^T @ [s; a; n]^T + b0^T.
        if features_major:
            # Inputs are (feat, tile): plain NN matmuls, batch already on lanes.
            h = jnp.dot(p[0][...], s, preferred_element_type=jnp.float32)
            h = h + jnp.dot(p[1][...], a, preferred_element_type=jnp.float32)
            h = h + jnp.dot(p[2][...], n, preferred_element_type=jnp.float32)
        else:
            # Inputs are (tile, feat): "NT" matmuls (contract trailing axes of both),
            # so the batch lands on the lane axis with no explicit transpose.
            h = lax.dot_general(p[0][...], s, nt_dims,
                                preferred_element_type=jnp.float32)
            h = h + lax.dot_general(p[1][...], a, nt_dims,
                                    preferred_element_type=jnp.float32)
            h = h + lax.dot_general(p[2][...], n, nt_dims,
                                    preferred_element_type=jnp.float32)
        h = h + p[3][...]                              # (H1, 1): lane broadcast
        h = jnp.maximum(h, 0.0) if n_layers > 1 else jax.nn.sigmoid(h)

        # Remaining layers: h_{l+1} = act(W_l^T @ h_l + b_l^T).
        for l in range(1, n_layers):
            w_t = p[2 + 2 * l][...]                    # (H_out, H_in)
            b_t = p[3 + 2 * l][...]                    # (H_out, 1)
            h = jnp.dot(w_t, h, preferred_element_type=jnp.float32) + b_t
            if l < n_layers - 1:
                h = jnp.maximum(h, 0.0)                # relu
            else:
                h = jax.nn.sigmoid(h)                  # last_activation

        o_ref[...] = h.astype(o_ref.dtype)             # (1, tile): lane-dense store

    return kernel


def _const_spec(shape, single_buffered):
    """Grid-invariant (fetch-once) weight/bias block spec."""
    if single_buffered:
        return pl.BlockSpec(shape, lambda i: (0, 0), pipeline_mode=pl.Buffered(1))
    return pl.BlockSpec(shape, lambda i: (0, 0))


def _build_pallas_call(kernel, grid, tile, padded, ds, da, param_shapes,
                       features_major, single_buffered):
    if features_major:
        def inp(feat):
            return pl.BlockSpec((feat, tile), lambda i: (0, i))
    else:
        def inp(feat):
            return pl.BlockSpec((tile, feat), lambda i: (i, 0))

    in_specs = [inp(ds), inp(da), inp(ds)]
    in_specs += [_const_spec(s, single_buffered) for s in param_shapes]
    out_spec = pl.BlockSpec((1, tile), lambda i: (0, i))   # batch on lanes

    return pl.pallas_call(
        kernel,
        out_shape=jax.ShapeDtypeStruct((1, padded), jnp.float32),
        grid_spec=pltpu.PrefetchScalarGridSpec(
            num_scalar_prefetch=0,
            grid=(grid,),
            in_specs=in_specs,
            out_specs=out_spec,
        ),
        compiler_params=pltpu.CompilerParams(
            dimension_semantics=("parallel",),
            vmem_limit_bytes=_VMEM_LIMIT_BYTES,
        ),
    )


def _as_kernel_dtype(x):
    x = jnp.asarray(x)
    if x.dtype in (jnp.float32, jnp.bfloat16):
        return x                      # bf16 allowed (cast at producer, not here)
    return x.astype(jnp.float32)


def termination_fn_forward(states, actions, next_states, params, *,
                           batch_tile=None, features_major=False):
    """Pallas implementation of TerminationFn.forward.

    Default layout (matches the torch module):
        states/next_states: (B, state_dim), actions: (B, action_dim).
    With features_major=True the caller supplies (state_dim, B)/(action_dim, B)
    arrays (lane-dense path; no transpose is performed here).
    params: list of (W, b) with W: (f_in, f_out), b: (1, f_out)  (y = x @ W + b,
            i.e. W is torch's Linear weight transposed).
    Returns: (B, 1) float32 probabilities in [0, 1].
    """
    states = _as_kernel_dtype(states)
    actions = _as_kernel_dtype(actions)
    next_states = _as_kernel_dtype(next_states)

    if features_major:
        ds, B = states.shape
        da = actions.shape[0]
        assert actions.shape[1] == B and next_states.shape == (ds, B)
    else:
        B, ds = states.shape
        da = actions.shape[1]
        assert actions.shape[0] == B and next_states.shape == (B, ds)

    n_layers = len(params)
    assert params[0][0].shape[0] == 2 * ds + da, "W0 rows must match concat width"
    hidden_max = max(int(w.shape[1]) for w, _ in params)

    if batch_tile is None:
        batch_tile = 16384 if features_major else 8192

    tile, grid, padded = _plan_tiles(B, batch_tile, (ds, da, ds),
                                     hidden_max, features_major)

    # Pre-transpose the (tiny, few-KiB) parameters and split W0 into the three
    # row blocks that multiply states / actions / next_states (fused concat).
    w0, b0 = params[0]
    flat_params = [
        jnp.asarray(w0[:ds, :].T, jnp.float32),            # (H1, ds)
        jnp.asarray(w0[ds:ds + da, :].T, jnp.float32),     # (H1, da)
        jnp.asarray(w0[ds + da:, :].T, jnp.float32),       # (H1, ds)
        jnp.asarray(b0.T, jnp.float32),                    # (H1, 1)
    ]
    for w, b in params[1:]:
        flat_params.append(jnp.asarray(w.T, jnp.float32))  # (H_out, H_in)
        flat_params.append(jnp.asarray(b.T, jnp.float32))  # (H_out, 1)
    param_shapes = [p.shape for p in flat_params]

    kernel = make_termination_mlp_kernel(n_layers, features_major)

    single_buffered = hasattr(pl, "Buffered")
    try:
        call = _build_pallas_call(kernel, grid, tile, padded, ds, da,
                                  param_shapes, features_major, single_buffered)
        out = call(states, actions, next_states, *flat_params)
    except Exception:
        if not single_buffered:
            raise
        # Fallback: same kernel, default double-buffered weight blocks.
        call = _build_pallas_call(kernel, grid, tile, padded, ds, da,
                                  param_shapes, features_major, False)
        out = call(states, actions, next_states, *flat_params)

    # out is (1, grid*tile): lanes are consecutive batch rows; drop the ragged tail.
    return out[0, :B][:, None]


def init_params(key, layer_dims):
    """Deterministic synthetic parameter init for the MLP (Linear layers)."""
    params = []
    for f_in, f_out in zip(layer_dims[:-1], layer_dims[1:]):
        key, kw, kb = jax.random.split(key, 3)
        scale = 1.0 / jnp.sqrt(jnp.float32(f_in))
        w = jax.random.uniform(kw, (f_in, f_out), jnp.float32, -scale, scale)
        b = jax.random.uniform(kb, (1, f_out), jnp.float32, -scale, scale)
        params.append((w, b))
    return params


def reference_forward(states, actions, next_states, params):
    """Plain-JAX reference of the same forward pass (for a sanity check)."""
    h = jnp.concatenate([states, actions, next_states], axis=1).astype(jnp.float32)
    n = len(params)
    for l, (w, b) in enumerate(params):
        h = h @ w + b
        h = jnp.maximum(h, 0.0) if l < n - 1 else jax.nn.sigmoid(h)
    return h


if __name__ == "__main__":
    # Small shapes consistent with the module.
    state_dim = 12
    action_dim = 8
    hidden_dims = [32, 32]

    input_dim = state_dim * 2 + action_dim     # 2*12 + 8 = 32
    output_dim = 1
    layer_dims = [input_dim] + hidden_dims + [output_dim]

    key = jax.random.PRNGKey(0)
    key, ks, ka, kn = jax.random.split(key, 4)
    params = init_params(key, layer_dims)

    # Case 1: tiny batch (single grid step).
    batch = 16
    states = jax.random.normal(ks, (batch, state_dim), jnp.float32)
    actions = jax.random.normal(ka, (batch, action_dim), jnp.float32)
    next_states = jax.random.normal(kn, (batch, state_dim), jnp.float32)

    out = jax.block_until_ready(
        termination_fn_forward(states, actions, next_states, params))
    ref = reference_forward(states, actions, next_states, params)
    assert out.shape == (batch, 1)
    assert jnp.allclose(out, ref, atol=1e-5, rtol=1e-5), "mismatch (case 1)"

    # Case 2: ragged batch with a multi-step 'parallel' grid (forced small tile,
    # exercises the no-pad edge-block path).
    key, ks2, ka2, kn2 = jax.random.split(key, 4)
    batch2 = 300
    s2 = jax.random.normal(ks2, (batch2, state_dim), jnp.float32)
    a2 = jax.random.normal(ka2, (batch2, action_dim), jnp.float32)
    n2 = jax.random.normal(kn2, (batch2, state_dim), jnp.float32)
    out2 = jax.block_until_ready(
        termination_fn_forward(s2, a2, n2, params, batch_tile=128))
    ref2 = reference_forward(s2, a2, n2, params)
    assert out2.shape == (batch2, 1)
    assert jnp.allclose(out2, ref2, atol=1e-5, rtol=1e-5), "mismatch (case 2)"

    # Case 3: feature-major (lane-dense input) path; transpose here is test-only,
    # a real producer would emit (feat, B) directly.
    out3 = jax.block_until_ready(
        termination_fn_forward(s2.T, a2.T, n2.T, params,
                               batch_tile=128, features_major=True))
    assert jnp.allclose(out3, ref2, atol=1e-5, rtol=1e-5), "mismatch (case 3)"

    # done(): model_output.ge(0.5) -- trivial elementwise compare, done in JAX glue.
    _ = out >= 0.5

    print("KERNEL_OK")
</pallas_src>

<mosaic_0001>
module attributes {stable_mosaic.version = 11 : i64} {
  func.func @kernel(%arg0: i32, %arg1: memref<128x12xf32, #tpu.memory_space<vmem>>, %arg2: memref<128x8xf32, #tpu.memory_space<vmem>>, %arg3: memref<128x12xf32, #tpu.memory_space<vmem>>, %arg4: memref<32x12xf32, #tpu.memory_space<vmem>>, %arg5: memref<32x8xf32, #tpu.memory_space<vmem>>, %arg6: memref<32x12xf32, #tpu.memory_space<vmem>>, %arg7: memref<32x1xf32, #tpu.memory_space<vmem>>, %arg8: memref<32x32xf32, #tpu.memory_space<vmem>>, %arg9: memref<32x1xf32, #tpu.memory_space<vmem>>, %arg10: memref<1x32xf32, #tpu.memory_space<vmem>>, %arg11: memref<1x1xf32, #tpu.memory_space<vmem>>, %arg12: memref<1x128xf32, #tpu.memory_space<vmem>>) attributes {dimension_semantics = [#tpu.dimension_semantics<parallel>], iteration_bounds = array<i64: 1>, scalar_prefetch = 0 : i64, scratch_operands = 0 : i64, tpu.core_type = #tpu.core_type<tc>, window_params = [{transform_indices = @transform_0, window_bounds = array<i64: 128, 12>}, {transform_indices = @transform_1, window_bounds = array<i64: 128, 8>}, {transform_indices = @transform_2, window_bounds = array<i64: 128, 12>}, {pipeline_mode = #tpu.pipeline_mode<synchronous>, transform_indices = @transform_3, window_bounds = array<i64: 32, 12>}, {pipeline_mode = #tpu.pipeline_mode<synchronous>, transform_indices = @transform_4, window_bounds = array<i64: 32, 8>}, {pipeline_mode = #tpu.pipeline_mode<synchronous>, transform_indices = @transform_5, window_bounds = array<i64: 32, 12>}, {pipeline_mode = #tpu.pipeline_mode<synchronous>, transform_indices = @transform_6, window_bounds = array<i64: 32, 1>}, {pipeline_mode = #tpu.pipeline_mode<synchronous>, transform_indices = @transform_7, window_bounds = array<i64: 32, 32>}, {pipeline_mode = #tpu.pipeline_mode<synchronous>, transform_indices = @transform_8, window_bounds = array<i64: 32, 1>}, {pipeline_mode = #tpu.pipeline_mode<synchronous>, transform_indices = @transform_9, window_bounds = array<i64: 1, 32>}, {pipeline_mode = #tpu.pipeline_mode<synchronous>, transform_indices = @transform_10, window_bounds = array<i64: 1, 1>}, {transform_indices = @transform_11, window_bounds = array<i64: 1, 128>}]} {
    %c0 = arith.constant 0 : index
    %c0_0 = arith.constant 0 : index
    %0 = vector.load %arg1[%c0, %c0_0] : memref<128x12xf32, #tpu.memory_space<vmem>>, vector<128x12xf32>
    %c0_1 = arith.constant 0 : index
    %c0_2 = arith.constant 0 : index
    %1 = vector.load %arg2[%c0_1, %c0_2] : memref<128x8xf32, #tpu.memory_space<vmem>>, vector<128x8xf32>
    %c0_3 = arith.constant 0 : index
    %c0_4 = arith.constant 0 : index
    %2 = vector.load %arg3[%c0_3, %c0_4] : memref<128x12xf32, #tpu.memory_space<vmem>>, vector<128x12xf32>
    %c0_5 = arith.constant 0 : index
    %c0_6 = arith.constant 0 : index
    %3 = vector.load %arg4[%c0_5, %c0_6] : memref<32x12xf32, #tpu.memory_space<vmem>>, vector<32x12xf32>
    %cst = arith.constant dense<0.000000e+00> : vector<32x128xf32>
    %4 = tpu.matmul %3, %0, %cst {dimension_numbers = #tpu.dot_dimension_numbers<[1], [1], [0], [0], [0, 0, 1, 0], [], []>} : vector<32x12xf32>, vector<128x12xf32>, vector<32x128xf32> -> vector<32x128xf32>
    %c0_7 = arith.constant 0 : index
    %c0_8 = arith.constant 0 : index
    %5 = vector.load %arg5[%c0_7, %c0_8] : memref<32x8xf32, #tpu.memory_space<vmem>>, vector<32x8xf32>
    %cst_9 = arith.constant dense<0.000000e+00> : vector<32x128xf32>
    %6 = tpu.matmul %5, %1, %cst_9 {dimension_numbers = #tpu.dot_dimension_numbers<[1], [1], [0], [0], [0, 0, 1, 0], [], []>} : vector<32x8xf32>, vector<128x8xf32>, vector<32x128xf32> -> vector<32x128xf32>
    %7 = arith.addf %4, %6 : vector<32x128xf32>
    %c0_10 = arith.constant 0 : index
    %c0_11 = arith.constant 0 : index
    %8 = vector.load %arg6[%c0_10, %c0_11] : memref<32x12xf32, #tpu.memory_space<vmem>>, vector<32x12xf32>
    %cst_12 = arith.constant dense<0.000000e+00> : vector<32x128xf32>
    %9 = tpu.matmul %8, %2, %cst_12 {dimension_numbers = #tpu.dot_dimension_numbers<[1], [1], [0], [0], [0, 0, 1, 0], [], []>} : vector<32x12xf32>, vector<128x12xf32>, vector<32x128xf32> -> vector<32x128xf32>
    %10 = arith.addf %7, %9 : vector<32x128xf32>
    %c0_13 = arith.constant 0 : index
    %c0_14 = arith.constant 0 : index
    %11 = vector.load %arg7[%c0_13, %c0_14] : memref<32x1xf32, #tpu.memory_space<vmem>>, vector<32x1xf32>
    %12 = vector.broadcast %11 : vector<32x1xf32> to vector<32x128xf32>
    %13 = arith.addf %10, %12 : vector<32x128xf32>
    %cst_15 = arith.constant 0.000000e+00 : f32
    %14 = vector.broadcast %cst_15 : f32 to vector<32x128xf32>
    %15 = arith.maximumf %13, %14 : vector<32x128xf32>
    %c0_16 = arith.constant 0 : index
    %c0_17 = arith.constant 0 : index
    %16 = vector.load %arg8[%c0_16, %c0_17] : memref<32x32xf32, #tpu.memory_space<vmem>>, vector<32x32xf32>
    %c0_18 = arith.constant 0 : index
    %c0_19 = arith.constant 0 : index
    %17 = vector.load %arg9[%c0_18, %c0_19] : memref<32x1xf32, #tpu.memory_space<vmem>>, vector<32x1xf32>
    %cst_20 = arith.constant dense<0.000000e+00> : vector<32x128xf32>
    %18 = tpu.matmul %16, %15, %cst_20 {dimension_numbers = #tpu.dot_dimension_numbers<[1], [0], [0], [1], [0, 0, 1, 1], [], []>} : vector<32x32xf32>, vector<32x128xf32>, vector<32x128xf32> -> vector<32x128xf32>
    %19 = vector.broadcast %17 : vector<32x1xf32> to vector<32x128xf32>
    %20 = arith.addf %18, %19 : vector<32x128xf32>
    %cst_21 = arith.constant 0.000000e+00 : f32
    %21 = vector.broadcast %cst_21 : f32 to vector<32x128xf32>
    %22 = arith.maximumf %20, %21 : vector<32x128xf32>
    %c0_22 = arith.constant 0 : index
    %c0_23 = arith.constant 0 : index
    %23 = vector.load %arg10[%c0_22, %c0_23] : memref<1x32xf32, #tpu.memory_space<vmem>>, vector<1x32xf32>
    %c0_24 = arith.constant 0 : index
    %c0_25 = arith.constant 0 : index
    %24 = vector.load %arg11[%c0_24, %c0_25] : memref<1x1xf32, #tpu.memory_space<vmem>>, vector<1x1xf32>
    %cst_26 = arith.constant dense<0.000000e+00> : vector<1x128xf32>
    %25 = tpu.matmul %23, %22, %cst_26 {dimension_numbers = #tpu.dot_dimension_numbers<[1], [0], [0], [1], [0, 0, 1, 1], [], []>} : vector<1x32xf32>, vector<32x128xf32>, vector<1x128xf32> -> vector<1x128xf32>
    %26 = vector.broadcast %24 : vector<1x1xf32> to vector<1x128xf32>
    %27 = arith.addf %25, %26 : vector<1x128xf32>
    %28 = arith.negf %27 : vector<1x128xf32>
    %29 = math.exp %28 : vector<1x128xf32>
    %cst_27 = arith.constant 1.000000e+00 : f32
    %30 = vector.broadcast %cst_27 : f32 to vector<1x128xf32>
    %31 = arith.addf %30, %29 : vector<1x128xf32>
    %32 = arith.divf %30, %31 : vector<1x128xf32>
    %c0_28 = arith.constant 0 : index
    %c0_29 = arith.constant 0 : index
    %33 = vector.load %arg12[%c0_28, %c0_29] : memref<1x128xf32, #tpu.memory_space<vmem>>, vector<1x128xf32>
    tpu.vector_store %arg12[%c0_28, %c0_29], %32 {strides = array<i32>} : memref<1x128xf32, #tpu.memory_space<vmem>>, vector<1x128xf32>,
    return
  }
  func.func @transform_0(%arg0: i32) -> (i32, i32) {
    %c0_i32 = arith.constant 0 : i32
    %c0_i32_0 = arith.constant 0 : i32
    return %arg0, %c0_i32 : i32, i32
  }
  func.func @transform_1(%arg0: i32) -> (i32, i32) {
    %c0_i32 = arith.constant 0 : i32
    %c0_i32_0 = arith.constant 0 : i32
    return %arg0, %c0_i32 : i32, i32
  }
  func.func @transform_2(%arg0: i32) -> (i32, i32) {
    %c0_i32 = arith.constant 0 : i32
    %c0_i32_0 = arith.constant 0 : i32
    return %arg0, %c0_i32 : i32, i32
  }
  func.func @transform_3(%arg0: i32) -> (i32, i32) {
    %c0_i32 = arith.constant 0 : i32
    %c0_i32_0 = arith.constant 0 : i32
    %c0_i32_1 = arith.constant 0 : i32
    return %c0_i32, %c0_i32_0 : i32, i32
  }
  func.func @transform_4(%arg0: i32) -> (i32, i32) {
    %c0_i32 = arith.constant 0 : i32
    %c0_i32_0 = arith.constant 0 : i32
    %c0_i32_1 = arith.constant 0 : i32
    return %c0_i32, %c0_i32_0 : i32, i32
  }
  func.func @transform_5(%arg0: i32) -> (i32, i32) {
    %c0_i32 = arith.constant 0 : i32
    %c0_i32_0 = arith.constant 0 : i32
    %c0_i32_1 = arith.constant 0 : i32
    return %c0_i32, %c0_i32_0 : i32, i32
  }
  func.func @transform_6(%arg0: i32) -> (i32, i32) {
    %c0_i32 = arith.constant 0 : i32
    %c0_i32_0 = arith.constant 0 : i32
    %c0_i32_1 = arith.constant 0 : i32
    return %c0_i32, %c0_i32_0 : i32, i32
  }
  func.func @transform_7(%arg0: i32) -> (i32, i32) {
    %c0_i32 = arith.constant 0 : i32
    %c0_i32_0 = arith.constant 0 : i32
    %c0_i32_1 = arith.constant 0 : i32
    return %c0_i32, %c0_i32_0 : i32, i32
  }
  func.func @transform_8(%arg0: i32) -> (i32, i32) {
    %c0_i32 = arith.constant 0 : i32
    %c0_i32_0 = arith.constant 0 : i32
    %c0_i32_1 = arith.constant 0 : i32
    return %c0_i32, %c0_i32_0 : i32, i32
  }
  func.func @transform_9(%arg0: i32) -> (i32, i32) {
    %c0_i32 = arith.constant 0 : i32
    %c0_i32_0 = arith.constant 0 : i32
    %c0_i32_1 = arith.constant 0 : i32
    return %c0_i32, %c0_i32_0 : i32, i32
  }
  func.func @transform_10(%arg0: i32) -> (i32, i32) {
    %c0_i32 = arith.constant 0 : i32
    %c0_i32_0 = arith.constant 0 : i32
    %c0_i32_1 = arith.constant 0 : i32
    return %c0_i32, %c0_i32_0 : i32, i32
  }
  func.func @transform_11(%arg0: i32) -> (i32, i32) {
    %c0_i32 = arith.constant 0 : i32
    %c0_i32_0 = arith.constant 0 : i32
    return %c0_i32, %arg0 : i32, i32
  }
}

module attributes {stable_mosaic.version = 11 : i64} {
  func.func @kernel(%arg0: i32, %arg1: memref<128x12xf32, #tpu.memory_space<vmem>>, %arg2: memref<128x8xf32, #tpu.memory_space<vmem>>, %arg3: memref<128x12xf32, #tpu.memory_space<vmem>>, %arg4: memref<32x12xf32, #tpu.memory_space<vmem>>, %arg5: memref<32x8xf32, #tpu.memory_space<vmem>>, %arg6: memref<32x12xf32, #tpu.memory_space<vmem>>, %arg7: memref<32x1xf32, #tpu.memory_space<vmem>>, %arg8: memref<32x32xf32, #tpu.memory_space<vmem>>, %arg9: memref<32x1xf32, #tpu.memory_space<vmem>>, %arg10: memref<1x32xf32, #tpu.memory_space<vmem>>, %arg11: memref<1x1xf32, #tpu.memory_space<vmem>>, %arg12: memref<1x128xf32, #tpu.memory_space<vmem>>) attributes {dimension_semantics = [#tpu.dimension_semantics<parallel>], iteration_bounds = array<i64: 1>, scalar_prefetch = 0 : i64, scratch_operands = 0 : i64, tpu.core_type = #tpu.core_type<tc>, window_params = [{transform_indices = @transform_0, window_bounds = array<i64: 128, 12>}, {transform_indices = @transform_1, window_bounds = array<i64: 128, 8>}, {transform_indices = @transform_2, window_bounds = array<i64: 128, 12>}, {pipeline_mode = #tpu.pipeline_mode<synchronous>, transform_indices = @transform_3, window_bounds = array<i64: 32, 12>}, {pipeline_mode = #tpu.pipeline_mode<synchronous>, transform_indices = @transform_4, window_bounds = array<i64: 32, 8>}, {pipeline_mode = #tpu.pipeline_mode<synchronous>, transform_indices = @transform_5, window_bounds = array<i64: 32, 12>}, {pipeline_mode = #tpu.pipeline_mode<synchronous>, transform_indices = @transform_6, window_bounds = array<i64: 32, 1>}, {pipeline_mode = #tpu.pipeline_mode<synchronous>, transform_indices = @transform_7, window_bounds = array<i64: 32, 32>}, {pipeline_mode = #tpu.pipeline_mode<synchronous>, transform_indices = @transform_8, window_bounds = array<i64: 32, 1>}, {pipeline_mode = #tpu.pipeline_mode<synchronous>, transform_indices = @transform_9, window_bounds = array<i64: 1, 32>}, {pipeline_mode = #tpu.pipeline_mode<synchronous>, transform_indices = @transform_10, window_bounds = array<i64: 1, 1>}, {transform_indices = @transform_11, window_bounds = array<i64: 1, 128>}]} {
    %c0 = arith.constant 0 : index
    %c0_0 = arith.constant 0 : index
    %0 = vector.load %arg1[%c0, %c0_0] : memref<128x12xf32, #tpu.memory_space<vmem>>, vector<128x12xf32>
    %c0_1 = arith.constant 0 : index
    %c0_2 = arith.constant 0 : index
    %1 = vector.load %arg2[%c0_1, %c0_2] : memref<128x8xf32, #tpu.memory_space<vmem>>, vector<128x8xf32>
    %c0_3 = arith.constant 0 : index
    %c0_4 = arith.constant 0 : index
    %2 = vector.load %arg3[%c0_3, %c0_4] : memref<128x12xf32, #tpu.memory_space<vmem>>, vector<128x12xf32>
    %c0_5 = arith.constant 0 : index
    %c0_6 = arith.constant 0 : index
    %3 = vector.load %arg4[%c0_5, %c0_6] : memref<32x12xf32, #tpu.memory_space<vmem>>, vector<32x12xf32>
    %cst = arith.constant dense<0.000000e+00> : vector<32x128xf32>
    %4 = tpu.matmul %3, %0, %cst {dimension_numbers = #tpu.dot_dimension_numbers<[1], [1], [0], [0], [0, 0, 1, 0], [], []>} : vector<32x12xf32>, vector<128x12xf32>, vector<32x128xf32> -> vector<32x128xf32>
    %c0_7 = arith.constant 0 : index
    %c0_8 = arith.constant 0 : index
    %5 = vector.load %arg5[%c0_7, %c0_8] : memref<32x8xf32, #tpu.memory_space<vmem>>, vector<32x8xf32>
    %cst_9 = arith.constant dense<0.000000e+00> : vector<32x128xf32>
    %6 = tpu.matmul %5, %1, %cst_9 {dimension_numbers = #tpu.dot_dimension_numbers<[1], [1], [0], [0], [0, 0, 1, 0], [], []>} : vector<32x8xf32>, vector<128x8xf32>, vector<32x128xf32> -> vector<32x128xf32>
    %7 = arith.addf %4, %6 : vector<32x128xf32>
    %c0_10 = arith.constant 0 : index
    %c0_11 = arith.constant 0 : index
    %8 = vector.load %arg6[%c0_10, %c0_11] : memref<32x12xf32, #tpu.memory_space<vmem>>, vector<32x12xf32>
    %cst_12 = arith.constant dense<0.000000e+00> : vector<32x128xf32>
    %9 = tpu.matmul %8, %2, %cst_12 {dimension_numbers = #tpu.dot_dimension_numbers<[1], [1], [0], [0], [0, 0, 1, 0], [], []>} : vector<32x12xf32>, vector<128x12xf32>, vector<32x128xf32> -> vector<32x128xf32>
    %10 = arith.addf %7, %9 : vector<32x128xf32>
    %c0_13 = arith.constant 0 : index
    %c0_14 = arith.constant 0 : index
    %11 = vector.load %arg7[%c0_13, %c0_14] : memref<32x1xf32, #tpu.memory_space<vmem>>, vector<32x1xf32>
    %12 = vector.broadcast %11 : vector<32x1xf32> to vector<32x128xf32>
    %13 = arith.addf %10, %12 : vector<32x128xf32>
    %cst_15 = arith.constant 0.000000e+00 : f32
    %14 = vector.broadcast %cst_15 : f32 to vector<32x128xf32>
    %15 = arith.maximumf %13, %14 : vector<32x128xf32>
    %c0_16 = arith.constant 0 : index
    %c0_17 = arith.constant 0 : index
    %16 = vector.load %arg8[%c0_16, %c0_17] : memref<32x32xf32, #tpu.memory_space<vmem>>, vector<32x32xf32>
    %c0_18 = arith.constant 0 : index
    %c0_19 = arith.constant 0 : index
    %17 = vector.load %arg9[%c0_18, %c0_19] : memref<32x1xf32, #tpu.memory_space<vmem>>, vector<32x1xf32>
    %cst_20 = arith.constant dense<0.000000e+00> : vector<32x128xf32>
    %18 = tpu.matmul %16, %15, %cst_20 {dimension_numbers = #tpu.dot_dimension_numbers<[1], [0], [0], [1], [0, 0, 1, 1], [], []>} : vector<32x32xf32>, vector<32x128xf32>, vector<32x128xf32> -> vector<32x128xf32>
    %19 = vector.broadcast %17 : vector<32x1xf32> to vector<32x128xf32>
    %20 = arith.addf %18, %19 : vector<32x128xf32>
    %cst_21 = arith.constant 0.000000e+00 : f32
    %21 = vector.broadcast %cst_21 : f32 to vector<32x128xf32>
    %22 = arith.maximumf %20, %21 : vector<32x128xf32>
    %c0_22 = arith.constant 0 : index
    %c0_23 = arith.constant 0 : index
    %23 = vector.load %arg10[%c0_22, %c0_23] : memref<1x32xf32, #tpu.memory_space<vmem>>, vector<1x32xf32>
    %c0_24 = arith.constant 0 : index
    %c0_25 = arith.constant 0 : index
    %24 = vector.load %arg11[%c0_24, %c0_25] : memref<1x1xf32, #tpu.memory_space<vmem>>, vector<1x1xf32>
    %cst_26 = arith.constant dense<0.000000e+00> : vector<1x128xf32>
    %25 = tpu.matmul %23, %22, %cst_26 {dimension_numbers = #tpu.dot_dimension_numbers<[1], [0], [0], [1], [0, 0, 1, 1], [], []>} : vector<1x32xf32>, vector<32x128xf32>, vector<1x128xf32> -> vector<1x128xf32>
    %26 = vector.broadcast %24 : vector<1x1xf32> to vector<1x128xf32>
    %27 = arith.addf %25, %26 : vector<1x128xf32>
    %28 = arith.negf %27 : vector<1x128xf32>
    %29 = math.exp %28 : vector<1x128xf32>
    %cst_27 = arith.constant 1.000000e+00 : f32
    %30 = vector.broadcast %cst_27 : f32 to vector<1x128xf32>
    %31 = arith.addf %30, %29 : vector<1x128xf32>
    %32 = arith.divf %30, %31 : vector<1x128xf32>
    %c0_28 = arith.constant 0 : index
    %c0_29 = arith.constant 0 : index
    %33 = vector.load %arg12[%c0_28, %c0_29] : memref<1x128xf32, #tpu.memory_space<vmem>>, vector<1x128xf32>
    tpu.vector_store %arg12[%c0_28, %c0_29], %32 {strides = array<i32>} : memref<1x128xf32, #tpu.memory_space<vmem>>, vector<1x128xf32>,
    return
  }
  func.func @transform_0(%arg0: i32) -> (i32, i32) {
    %c0_i32 = arith.constant 0 : i32
    %c0_i32_0 = arith.constant 0 : i32
    return %arg0, %c0_i32 : i32, i32
  }
  func.func @transform_1(%arg0: i32) -> (i32, i32) {
    %c0_i32 = arith.constant 0 : i32
    %c0_i32_0 = arith.constant 0 : i32
    return %arg0, %c0_i32 : i32, i32
  }
  func.func @transform_2(%arg0: i32) -> (i32, i32) {
    %c0_i32 = arith.constant 0 : i32
    %c0_i32_0 = arith.constant 0 : i32
    return %arg0, %c0_i32 : i32, i32
  }
  func.func @transform_3(%arg0: i32) -> (i32, i32) {
    %c0_i32 = arith.constant 0 : i32
    %c0_i32_0 = arith.constant 0 : i32
    %c0_i32_1 = arith.constant 0 : i32
    return %c0_i32, %c0_i32_0 : i32, i32
  }
  func.func @transform_4(%arg0: i32) -> (i32, i32) {
    %c0_i32 = arith.constant 0 : i32
    %c0_i32_0 = arith.constant 0 : i32
    %c0_i32_1 = arith.constant 0 : i32
    return %c0_i32, %c0_i32_0 : i32, i32
  }
  func.func @transform_5(%arg0: i32) -> (i32, i32) {
    %c0_i32 = arith.constant 0 : i32
    %c0_i32_0 = arith.constant 0 : i32
    %c0_i32_1 = arith.constant 0 : i32
    return %c0_i32, %c0_i32_0 : i32, i32
  }
  func.func @transform_6(%arg0: i32) -> (i32, i32) {
    %c0_i32 = arith.constant 0 : i32
    %c0_i32_0 = arith.constant 0 : i32
    %c0_i32_1 = arith.constant 0 : i32
    return %c0_i32, %c0_i32_0 : i32, i32
  }
  func.func @transform_7(%arg0: i32) -> (i32, i32) {
    %c0_i32 = arith.constant 0 : i32
    %c0_i32_0 = arith.constant 0 : i32
    %c0_i32_1 = arith.constant 0 : i32
    return %c0_i32, %c0_i32_0 : i32, i32
  }
  func.func @transform_8(%arg0: i32) -> (i32, i32) {
    %c0_i32 = arith.constant 0 : i32
    %c0_i32_0 = arith.constant 0 : i32
    %c0_i32_1 = arith.constant 0 : i32
    return %c0_i32, %c0_i32_0 : i32, i32
  }
  func.func @transform_9(%arg0: i32) -> (i32, i32) {
    %c0_i32 = arith.constant 0 : i32
    %c0_i32_0 = arith.constant 0 : i32
    %c0_i32_1 = arith.constant 0 : i32
    return %c0_i32, %c0_i32_0 : i32, i32
  }
  func.func @transform_10(%arg0: i32) -> (i32, i32) {
    %c0_i32 = arith.constant 0 : i32
    %c0_i32_0 = arith.constant 0 : i32
    %c0_i32_1 = arith.constant 0 : i32
    return %c0_i32, %c0_i32_0 : i32, i32
  }
  func.func @transform_11(%arg0: i32) -> (i32, i32) {
    %c0_i32 = arith.constant 0 : i32
    %c0_i32_0 = arith.constant 0 : i32
    return %c0_i32, %arg0 : i32, i32
  }
}

</mosaic_0001>

<bundles_post_ra>
// kernel: tpu_custom_call.1
= control target key start
LH: loop header
LB: loop body
LE: loop exit
PB: predicated region body
PF: predicated region fallthrough
CT: control target
= control target key end

     0   :  { %s1000_s0 = inlined_call_operand.vmem [shape: f32[16,12], index: 0, kind: input, shape index: {}]   ;;  %s1001_s1 = inlined_call_operand.vmem [shape: f32[16,8], index: 1, kind: input, shape index: {}]   ;;  %s1002_s2 = inlined_call_operand.vmem [shape: f32[16,12], index: 2, kind: input, shape index: {}]   ;;  %s1003_s3 = inlined_call_operand.vmem [shape: f32[32,12], index: 3, kind: input, shape index: {}]   ;;  %s1004_s4 = inlined_call_operand.vmem [shape: f32[32,8], index: 4, kind: input, shape index: {}]   ;;  %s1005_s5 = inlined_call_operand.vmem [shape: f32[32,12], index: 5, kind: input, shape index: {}]   ;;  %s1006_s6 = inlined_call_operand.vmem [shape: f32[32,1], index: 6, kind: input, shape index: {}]   ;;  %s1007_s7 = inlined_call_operand.vmem [shape: f32[32,32], index: 7, kind: input, shape index: {}]   ;;  %s1008_s8 = inlined_call_operand.vmem [shape: f32[32,1], index: 8, kind: input, shape index: {}]   ;;  %s1009_s9 = inlined_call_operand.vmem [shape: f32[1,32], index: 9, kind: input, shape index: {}]   ;;  %s1010_s10 = inlined_call_operand.<no memory space> [shape: f32[1,1], index: 10, kind: input, shape index: {}]   ;;  %s1011_s11 = inlined_call_operand.hbm [shape: f32[1,128], index: 11, kind: output, shape index: {}]  }
   0x1   :  { %v16_v0 = vstv %s1010_s10 }
   0x2   :  { %17 = vst [vmem:[#allocation2] sm:$0x1] %v16_v0 }
   0x3   :  { %v88_v1 = vld [vmem:[%s1002_s2 + $0x78] sm:$0xff]  ;;  %vm187_vm0 = vcmask 97280   ;;  %vm97_vm1 = vcmask 64512   ;;  %v87_v4 = vld [vmem:[%s1002_s2 + $0x70] sm:$0xff]  ;;  %v86_v7 = vld [vmem:[%s1002_s2 + $0x68] sm:$0xff] }
   0x4   :  { %v72_v2 = vld [vmem:[%s1001_s1 + $0x78] sm:$0xff]  ;;  %587 = vmatpush.xpose.msk.msra.mxu2 %vm187_vm0, %v88_v1  ;;  %v71_v5 = vld [vmem:[%s1001_s1 + $0x70] sm:$0xff]  ;;  %v70_v8 = vld [vmem:[%s1001_s1 + $0x68] sm:$0xff] }
   0x5   :  { %v56_v3 = vld [vmem:[%s1000_s0 + $0x78] sm:$0xff]  ;;  %547 = vmatpush.xpose.msk.msra.mxu0 %vm97_vm1, %v72_v2  ;;  %v55_v6 = vld [vmem:[%s1000_s0 + $0x70] sm:$0xff]  ;;  %v54_v9 = vld [vmem:[%s1000_s0 + $0x68] sm:$0xff] }
   0x6   :  { %567 = vmatpush.xpose.msk.msra.mxu1 %vm187_vm0, %v56_v3  ;;  %v85_v10 = vld [vmem:[%s1002_s2 + $0x60] sm:$0xff] }
   0x7   :  { %v69_v11 = vld [vmem:[%s1001_s1 + $0x60] sm:$0xff] }
   0x8   :  { %588 = vmatpush.xpose.msk.msra.mxu2 %vm187_vm0, %v87_v4  ;;  %v53_v12 = vld [vmem:[%s1000_s0 + $0x60] sm:$0xff] }
   0x9   :  { %548 = vmatpush.xpose.msk.msra.mxu0 %vm97_vm1, %v71_v5 }
   0xa   :  { %568 = vmatpush.xpose.msk.msra.mxu1 %vm187_vm0, %v55_v6 }
   0xc   :  { %589 = vmatpush.xpose.msk.msra.mxu2 %vm187_vm0, %v86_v7 }
   0xd   :  { %549 = vmatpush.xpose.msk.msra.mxu0 %vm97_vm1, %v70_v8 }
   0xe   :  { %569 = vmatpush.xpose.msk.msra.mxu1 %vm187_vm0, %v54_v9 }
   0xf   :  { %18 = vsyncpa [#allocation4], 0  ;;  %v84_v13 = vld [vmem:[%s1002_s2 + $0x58] sm:$0xff]  ;;  %v83_v16 = vld [vmem:[%s1002_s2 + $0x50] sm:$0xff]  ;;  %v648_v37 = vmov 0   ;;  %vm434_vm2 = vcmask 261120  }
  0x10   :  { %590 = vmatpush.xpose.msk.msra.mxu2 %vm187_vm0, %v85_v10  ;;  %v68_v14 = vld [vmem:[%s1001_s1 + $0x58] sm:$0xff]  ;;  %v67_v17 = vld [vmem:[%s1001_s1 + $0x50] sm:$0xff]  ;;  %v82_v19 = vld [vmem:[%s1002_s2 + $0x48] sm:$0xff]  ;;  %616 = vset.pattern.permute.xlu1 %v648_v37  ;;  %s538_s15 = sshll.u32 %s1011_s11, 4  ;;  %s539_s15 = int_to_ptr.hbm [resolvable:$true] %s538_s15 }
  0x11   :  { %550 = vmatpush.xpose.msk.msra.mxu0 %vm97_vm1, %v69_v11  ;;  %v52_v15 = vld [vmem:[%s1000_s0 + $0x58] sm:$0xff]  ;;  %v51_v18 = vld [vmem:[%s1000_s0 + $0x50] sm:$0xff]  ;;  %v66_v20 = vld [vmem:[%s1001_s1 + $0x48] sm:$0xff]  ;;  %615 = vset.pattern.permute.xlu0 %v648_v37 }
  0x12   :  { %570 = vmatpush.xpose.msk.msra.mxu1 %vm187_vm0, %v53_v12  ;;  %v50_v21 = vld [vmem:[%s1000_s0 + $0x48] sm:$0xff]  ;;  %v81_v22 = vld [vmem:[%s1002_s2 + $0x40] sm:$0xff]  ;;  %v80_v25 = vld [vmem:[%s1002_s2 + $0x38] sm:$0xff]  ;;  %617 = vset.pattern.permute.xlu2 %v648_v37 }
  0x13   :  { %v65_v23 = vld [vmem:[%s1001_s1 + $0x40] sm:$0xff]  ;;  %v64_v26 = vld [vmem:[%s1001_s1 + $0x38] sm:$0xff]  ;;  %v79_v28 = vld [vmem:[%s1002_s2 + $0x30] sm:$0xff] }
  0x14   :  { %591 = vmatpush.xpose.msk.msra.mxu2 %vm187_vm0, %v84_v13  ;;  %v49_v24 = vld [vmem:[%s1000_s0 + $0x40] sm:$0xff]  ;;  %v48_v27 = vld [vmem:[%s1000_s0 + $0x38] sm:$0xff]  ;;  %v63_v29 = vld [vmem:[%s1001_s1 + $0x30] sm:$0xff] }
  0x15   :  { %551 = vmatpush.xpose.msk.msra.mxu0 %vm97_vm1, %v68_v14  ;;  %v47_v30 = vld [vmem:[%s1000_s0 + $0x30] sm:$0xff]  ;;  %v78_v31 = vld [vmem:[%s1002_s2 + $0x28] sm:$0xff]  ;;  %v77_v35 = vld [vmem:[%s1002_s2 + $0x20] sm:$0xff] }
  0x16   :  { %571 = vmatpush.xpose.msk.msra.mxu1 %vm187_vm0, %v52_v15  ;;  %v62_v32 = vld [vmem:[%s1001_s1 + $0x28] sm:$0xff]  ;;  %v61_v36 = vld [vmem:[%s1001_s1 + $0x20] sm:$0xff]  ;;  %v76_v39 = vld [vmem:[%s1002_s2 + $0x18] sm:$0xff] }
  0x17   :  { %v46_v33 = vld [vmem:[%s1000_s0 + $0x28] sm:$0xff]  ;;  %v45_v38 = vld [vmem:[%s1000_s0 + $0x20] sm:$0xff]  ;;  %v60_v40 = vld [vmem:[%s1001_s1 + $0x18] sm:$0xff] }
  0x18   :  { %592 = vmatpush.xpose.msk.msra.mxu2 %vm187_vm0, %v83_v16  ;;  %v375_v34 = vld [vmem:[%s1006_s6 + $0x8] sm:$0xff]  ;;  %v44_v41 = vld [vmem:[%s1000_s0 + $0x18] sm:$0xff]  ;;  %v374_v42 = vld [vmem:[%s1006_s6] sm:$0xff] }
  0x19   :  { %552 = vmatpush.xpose.msk.msra.mxu0 %vm97_vm1, %v67_v17  ;;  %385 = vperm.xlu1 %616, %v375_v34   ;;  %v377_v43 = vld [vmem:[%s1006_s6 + $0x18] sm:$0xff]  ;;  %v75_v44 = vld [vmem:[%s1002_s2 + $0x10] sm:$0xff]  ;;  %v74_v47 = vld [vmem:[%s1002_s2 + $0x8] sm:$0xff] }
  0x1a   :  { %572 = vmatpush.xpose.msk.msra.mxu1 %vm187_vm0, %v51_v18  ;;  %v59_v45 = vld [vmem:[%s1001_s1 + $0x10] sm:$0xff]  ;;  %395 = vperm.xlu0 %615, %v377_v43   ;;  %v58_v48 = vld [vmem:[%s1001_s1 + $0x8] sm:$0xff]  ;;  %v410_v51 = vld [vmem:[%s1008_s8] sm:$0xff] }
  0x1b   :  { %v43_v46 = vld [vmem:[%s1000_s0 + $0x10] sm:$0xff]  ;;  %v42_v49 = vld [vmem:[%s1000_s0 + $0x8] sm:$0xff]  ;;  %v73_v52 = vld [vmem:[%s1002_s2] sm:$0xff] }
  0x1c   :  { %593 = vmatpush.xpose.msk.msra.mxu2 %vm187_vm0, %v82_v19  ;;  %v376_v50 = vld [vmem:[%s1006_s6 + $0x10] sm:$0xff]  ;;  %v57_v53 = vld [vmem:[%s1001_s1] sm:$0xff]  ;;  %v411_v58 = vld [vmem:[%s1008_s8 + $0x8] sm:$0xff] }
  0x1d   :  { %553 = vmatpush.xpose.msk.msra.mxu0 %vm97_vm1, %v66_v20  ;;  %v41_v54 = vld [vmem:[%s1000_s0] sm:$0xff]  ;;  %v278_v59 = vld [vmem:[%s1005_s5 + $0x8] sm:$0xff]  ;;  %v279_v62 = vld [vmem:[%s1005_s5 + $0x10] sm:$0xff] }
  0x1e   :  { %573 = vmatpush.xpose.msk.msra.mxu1 %vm187_vm0, %v50_v21  ;;  %v277_v55 = vld [vmem:[%s1005_s5] sm:$0xff]  ;;  %v94_v60 = vld [vmem:[%s1004_s4 + $0x8] sm:$0xff]  ;;  %v95_v63 = vld [vmem:[%s1004_s4 + $0x10] sm:$0xff] }
  0x1f   :  { %v93_v56 = vld [vmem:[%s1004_s4] sm:$0xff]  ;;  %v90_v61 = vld [vmem:[%s1003_s3 + $0x8] sm:$0xff]  ;;  %v91_v0 = vld [vmem:[%s1003_s3 + $0x10] sm:$0xff] }
  0x20   :  { %594 = vmatpush.xpose.msk.msra.mxu2 %vm187_vm0, %v81_v22  ;;  %v89_v57 = vld [vmem:[%s1003_s3] sm:$0xff]  ;;  %v280_v1 = vld [vmem:[%s1005_s5 + $0x18] sm:$0xff] }
  0x21   :  { %554 = vmatpush.xpose.msk.msra.mxu0 %vm97_vm1, %v65_v23  ;;  %380 = vperm.xlu1 %616, %v374_v42   ;;  %v96_v2 = vld [vmem:[%s1004_s4 + $0x18] sm:$0xff]  ;;  %v406_v37 = vld [vmem:[%s1007_s7] sm:$0xff] }
  0x22   :  { %574 = vmatpush.xpose.msk.msra.mxu1 %vm187_vm0, %v49_v24  ;;  %390 = vperm.xlu0 %615, %v376_v50   ;;  %v92_v3 = vld [vmem:[%s1003_s3 + $0x18] sm:$0xff] }
  0x23   :  { %v409_v42 = vld [vmem:[%s1007_s7 + $0x18] sm:$0xff] }
  0x24   :  { %595 = vmatpush.xpose.msk.msra.mxu2 %vm187_vm0, %v80_v25 }
  0x25   :  { %555 = vmatpush.xpose.msk.msra.mxu0 %vm97_vm1, %v64_v26 }
  0x26   :  { %575 = vmatpush.xpose.msk.msra.mxu1 %vm187_vm0, %v48_v27 }
  0x28   :  { %596 = vmatpush.xpose.msk.msra.mxu2 %vm187_vm0, %v79_v28 }
  0x29   :  { %556 = vmatpush.xpose.msk.msra.mxu0 %vm97_vm1, %v63_v29  ;;  %416 = vperm.xlu1 %616, %v410_v51  }
  0x2a   :  { %576 = vmatpush.xpose.msk.msra.mxu1 %vm187_vm0, %v47_v30  ;;  %421 = vperm.xlu0 %615, %v411_v58  }
  0x2c   :  { %597 = vmatpush.xpose.msk.msra.mxu2 %vm187_vm0, %v78_v31 }
  0x2d   :  { %557 = vmatpush.xpose.msk.msra.mxu0 %vm97_vm1, %v62_v32  ;;  %v413_v32 = vld [vmem:[%s1008_s8 + $0x18] sm:$0xff] }
  0x2e   :  { %577 = vmatpush.xpose.msk.msra.mxu1 %vm187_vm0, %v46_v33  ;;  %431 = vperm.xlu2 %617, %v413_v32  }
  0x30   :  { %598 = vmatpush.xpose.msk.msra.mxu2 %vm187_vm0, %v77_v35 }
  0x31   :  { %558 = vmatpush.xpose.msk.msra.mxu0 %vm97_vm1, %v61_v36 }
  0x32   :  { %578 = vmatpush.xpose.msk.msra.mxu1 %vm187_vm0, %v45_v38  ;;  %v412_v38 = vld [vmem:[%s1008_s8 + $0x10] sm:$0xff] }
  0x34   :  { %599 = vmatpush.xpose.msk.msra.mxu2 %vm187_vm0, %v76_v39  ;;  %v407_v39 = vld [vmem:[%s1007_s7 + $0x8] sm:$0xff] }
  0x35   :  { %559 = vmatpush.xpose.msk.msra.mxu0 %vm97_vm1, %v60_v40  ;;  %v481_v40 = vld [vmem:[#allocation2] sm:$0x1] }
  0x36   :  { %579 = vmatpush.xpose.msk.msra.mxu1 %vm187_vm0, %v44_v41  ;;  %426 = vperm.xlu2 %617, %v412_v38   ;;  %v408_v41 = vld [vmem:[%s1007_s7 + $0x10] sm:$0xff] }
  0x38   :  { %600 = vmatpush.xpose.msk.msra.mxu2 %vm187_vm0, %v75_v44 }
  0x39   :  { %560 = vmatpush.xpose.msk.msra.mxu0 %vm97_vm1, %v59_v45 }
  0x3a   :  { %580 = vmatpush.xpose.msk.msra.mxu1 %vm187_vm0, %v43_v46 }
  0x3c   :  { %601 = vmatpush.xpose.msk.msra.mxu2 %vm187_vm0, %v74_v47 }
  0x3d   :  { %561 = vmatpush.xpose.msk.msra.mxu0 %vm97_vm1, %v58_v48 }
  0x3e   :  { %581 = vmatpush.xpose.msk.msra.mxu1 %vm187_vm0, %v42_v49  ;;  %484 = vperm.xlu2 %617, %v481_v40  }
  0x40   :  { %602 = vmatpush.xpose.msk.msra.mxu2 %vm187_vm0, %v73_v52 }
  0x41   :  { %562 = vmatpush.xpose.msk.msra.mxu0 %vm97_vm1, %v57_v53 }
  0x42   :  { %582 = vmatpush.xpose.msk.msra.mxu1 %vm187_vm0, %v41_v54 }
  0x43   :  { %603 = vmatmul.msk.f32.vlgmr.msra.gmra.mxu2 %vm187_vm0, %v277_v55 }
  0x44   :  { %563 = vmatmul.msk.f32.vlgmr.msra.gmra.mxu0 %vm97_vm1, %v93_v56 }
  0x45   :  { %583 = vmatmul.msk.f32.vlgmr.msra.gmra.mxu1 %vm187_vm0, %v89_v57 }
  0x4b   :  { %604 = vmatmul.msk.f32.gmra.mxu2 %vm187_vm0, %v278_v59  ;;  %v480_v59 = vld [vmem:[%s1009_s9] sm:$0x1]  ;;  %s649_s9 = smov [#allocation3]  }
  0x4c   :  { %564 = vmatmul.msk.f32.gmra.mxu0 %vm97_vm1, %v94_v60  ;;  %s536_s12 = sshll.u32 %s649_s9, 4  ;;  %s537_s12 = int_to_ptr.vmem [resolvable:$true] %s536_s12 }
  0x4d   :  { %584 = vmatmul.msk.f32.gmra.mxu1 %vm187_vm0, %v90_v61 }
  0x53   :  { %605 = vmatmul.msk.f32.gmra.mxu2 %vm187_vm0, %v279_v62 }
  0x54   :  { %565 = vmatmul.msk.f32.gmra.mxu0 %vm97_vm1, %v95_v63 }
  0x55   :  { %585 = vmatmul.msk.f32.gmra.mxu1 %vm187_vm0, %v91_v0 }
  0x5b   :  { %606 = vmatmul.msk.f32.gmra.mxu2 %vm187_vm0, %v280_v1 }
  0x5c   :  { %566 = vmatmul.msk.f32.gmra.mxu0 %vm97_vm1, %v96_v2 }
  0x5d   :  { %586 = vmatmul.msk.f32.gmra.mxu1 %vm187_vm0, %v92_v3 }
  0x88   :  { %v432_v45 = vpop.permute.xlu2 %431 }
  0x8b   :  { %v386_v14 = vpop.permute.xlu1 %385 }
  0x8c   :  { %v396_v12 = vpop.permute.xlu0 %395 }
  0x90   :  { %v427_v47 = vpop.permute.xlu2 %426 }
  0x93   :  { %v381_v29 = vpop.permute.xlu1 %380 }
  0x94   :  { %v391_v25 = vpop.permute.xlu0 %390 }
  0x98   :  { %v485_v60 = vpop.permute.xlu2 %484 }
  0x99   :  { %v487_v61 = vperm.slane %v485_v60, 0 }
  0x9b   :  { %v417_v54 = vpop.permute.xlu1 %416 }
  0x9c   :  { %v422_v51 = vpop.permute.xlu0 %421 }
  0xc1   :  { %v175_v4 = vpop.f32.mrf.mxu0 }
  0xc2   :  { %v265_v5 = vpop.f32.mrf.mxu1 }
  0xc3   :  { %v266_v20 = vadd.f32 %v265_v5, %v175_v4 }
  0xc6   :  { %v358_v6 = vpop.f32.mrf.mxu2 }
  0xc7   :  { %v370_v26 = vadd.f32 %v358_v6, %v266_v20 }
  0xc9   :  { %v178_v7 = vpop.f32.mrf.mxu0  ;;  %v398_v33 = vadd.f32 %v381_v29, %v370_v26 }
  0xca   :  { %v268_v8 = vpop.f32.mrf.mxu1 }
  0xcb   :  { %v269_v18 = vadd.f32 %v268_v8, %v178_v7  ;;  %v402_v36 = vmax.f32 %v398_v33, 0.0 }
  0xce   :  { %v361_v9 = vpop.f32.mrf.mxu2 }
  0xcf   :  { %v371_v23 = vadd.f32 %v361_v9, %v269_v18 }
  0xd1   :  { %v181_v10 = vpop.f32.mrf.mxu0  ;;  %v399_v31 = vadd.f32 %v386_v14, %v371_v23 }
  0xd2   :  { %v271_v11 = vpop.f32.mrf.mxu1 }
  0xd3   :  { %v272_v16 = vadd.f32 %v271_v11, %v181_v10  ;;  %v403_v35 = vmax.f32 %v399_v31, 0.0 }
  0xd6   :  { %v364_v13 = vpop.f32.mrf.mxu2 }
  0xd7   :  { %v372_v21 = vadd.f32 %v364_v13, %v272_v16 }
  0xd9   :  { %v184_v15 = vpop.f32.mrf.mxu0  ;;  %v400_v28 = vadd.f32 %v391_v25, %v372_v21 }
  0xda   :  { %v274_v17 = vpop.f32.mrf.mxu1 }
  0xdb   :  { %v275_v19 = vadd.f32 %v274_v17, %v184_v15  ;;  %v404_v34 = vmax.f32 %v400_v28, 0.0 }
  0xde   :  { %v367_v22 = vpop.f32.mrf.mxu2 }
  0xdf   :  { %v373_v24 = vadd.f32 %v367_v22, %v275_v19 }
  0xe1   :  { %v401_v27 = vadd.f32 %v396_v12, %v373_v24 }
  0xe3   :  { %v405_v30 = vmax.f32 %v401_v27, 0.0 }
  0xe5   :  { %459 = vmatpush.msra.mxu3 %v405_v30 }
  0xe7   :  { %460 = vmatpush.msra.mxu3 %v404_v34 }
  0xe9   :  { %461 = vmatpush.msra.mxu3 %v403_v35 }
  0xeb   :  { %462 = vmatpush.msra.mxu3 %v402_v36 }
  0xec   :  { %607 = vmatmul.msk.f32.vlgmr.msra.gmra.mxu3 %vm434_vm2, %v406_v37 }
  0xf4   :  { %608 = vmatmul.msk.f32.gmra.mxu3 %vm434_vm2, %v407_v39 }
  0xfc   :  { %609 = vmatmul.msk.f32.gmra.mxu3 %vm434_vm2, %v408_v41 }
 0x104   :  { %610 = vmatmul.msk.f32.gmra.mxu3 %vm434_vm2, %v409_v42 }
 0x16f   :  { %v464_v43 = vpop.f32.mrf.mxu3 }
 0x170   :  { %v465_v55 = vadd.f32 %v464_v43, %v417_v54 }
 0x172   :  { %v476_v58 = vmax.f32 %v465_v55, 0.0 }
 0x177   :  { %v467_v44 = vpop.f32.mrf.mxu3 }
 0x178   :  { %v468_v52 = vadd.f32 %v467_v44, %v422_v51 }
 0x17a   :  { %v477_v57 = vmax.f32 %v468_v52, 0.0 }
 0x17f   :  { %v470_v46 = vpop.f32.mrf.mxu3 }
 0x180   :  { %v471_v49 = vadd.f32 %v470_v46, %v427_v47 }
 0x182   :  { %v478_v56 = vmax.f32 %v471_v49, 0.0 }
 0x187   :  { %v473_v48 = vpop.f32.mrf.mxu3 }
 0x188   :  { %v474_v50 = vadd.f32 %v473_v48, %v432_v45 }
 0x18a   :  { %v479_v53 = vmax.f32 %v474_v50, 0.0 }
 0x18c   :  { %503 = vmatpush.msrb.mxu3 %v479_v53 }
 0x18e   :  { %504 = vmatpush.msrb.mxu3 %v478_v56 }
 0x190   :  { %505 = vmatpush.msrb.mxu3 %v477_v57 }
 0x192   :  { %506 = vmatpush.msrb.mxu3 %v476_v58 }
 0x193   :  { %611 = vmatmul.msk.f32.vlgmr.msrb.gmra.mxu3 %vm434_vm2, %v480_v59 }
 0x216   :  { %v508_v62 = vpop.f32.mrf.mxu3 }
 0x217   :  { %v509_v63 = vadd.f32 %v508_v62, %v487_v61 }
 0x219   :  { %v612_v0 = vmul.f32 -1.442695, %v509_v63 }
 0x21b   :  { %618 = vpow2.f32 %v612_v0 }
 0x221   :  { %v619_v1 = vpop.eup %618 }
 0x222   :  { %v514_v2 = vadd.f32 1.0, %v619_v1 }
 0x224   :  { %620 = vrcp.f32 %v514_v2  ;;  %v526_v6 = vand.u32 2147483648, %v514_v2  ;;  %v524_v8 = vand.u32 2147483647, %v514_v2  ;;  %vm520_vm4 = vweird.f32 %v514_v2 }
 0x226   :  { %v527_v10 = vor.u32 1.1754944e-38, %v526_v6  ;;  %vm525_vm6 = vcmp.eq.f32.partialorder %v524_v8, 8.507059e+37 }
 0x22a   :  { %v621_v3 = vpop.eup %620 }
 0x22b   :  { %v516_v4 = vmul.f32 %v621_v3, %v514_v2  ;;  %vm521_vm3 = vweird.f32 %v621_v3 }
 0x22c   :  { %vm522_vm5 = vmor %vm520_vm4, %vm521_vm3 }
 0x22d   :  { %v517_v5 = vsub.f32 1.0, %v516_v4 }
 0x22f   :  { %v518_v7 = vmul.f32 %v621_v3, %v517_v5 }
 0x231   :  { %v519_v9 = vadd.f32 %v621_v3, %v518_v7 }
 0x233   :  { %v523_v11 = vsel %vm522_vm5, %v621_v3, %v519_v9 }
 0x234   :  { %v528_v12 = vsel %vm525_vm6, %v527_v10, %v523_v11 }
 0x235   :  { %530 = vst [vmem:[#allocation3] sm:$0x1] %v528_v12 }
 0x236   :  { %541 = dma.vmem_to_hbm [thread:$0]  %s537_s12, 16, %s539_s15, [#allocation4]  }
 0x237   :  { %646 = dma.done.wait [#allocation4], 16  }
 0x238   :  { %647 = vsyncadd [#allocation4], 4294967280 }
 0x239   :  { %546 = vsyncpa [#allocation4], 1 }

// kernel: tpu_custom_call.1
= control target key start
LH: loop header
LB: loop body
LE: loop exit
PB: predicated region body
PF: predicated region fallthrough
CT: control target
= control target key end

     0   :  { %s1000_s0 = inlined_call_operand.vmem [shape: f32[16,12], index: 0, kind: input, shape index: {}]   ;;  %s1001_s1 = inlined_call_operand.vmem [shape: f32[16,8], index: 1, kind: input, shape index: {}]   ;;  %s1002_s2 = inlined_call_operand.vmem [shape: f32[16,12], index: 2, kind: input, shape index: {}]   ;;  %s1003_s3 = inlined_call_operand.vmem [shape: f32[32,12], index: 3, kind: input, shape index: {}]   ;;  %s1004_s4 = inlined_call_operand.vmem [shape: f32[32,8], index: 4, kind: input, shape index: {}]   ;;  %s1005_s5 = inlined_call_operand.vmem [shape: f32[32,12], index: 5, kind: input, shape index: {}]   ;;  %s1006_s6 = inlined_call_operand.vmem [shape: f32[32,1], index: 6, kind: input, shape index: {}]   ;;  %s1007_s7 = inlined_call_operand.vmem [shape: f32[32,32], index: 7, kind: input, shape index: {}]   ;;  %s1008_s8 = inlined_call_operand.vmem [shape: f32[32,1], index: 8, kind: input, shape index: {}]   ;;  %s1009_s9 = inlined_call_operand.vmem [shape: f32[1,32], index: 9, kind: input, shape index: {}]   ;;  %s1010_s10 = inlined_call_operand.<no memory space> [shape: f32[1,1], index: 10, kind: input, shape index: {}]   ;;  %s1011_s11 = inlined_call_operand.hbm [shape: f32[1,128], index: 11, kind: output, shape index: {}]  }
   0x1   :  { %v16_v0 = vstv %s1010_s10 }
   0x2   :  { %17 = vst [vmem:[#allocation2] sm:$0x1] %v16_v0 }
   0x3   :  { %v88_v1 = vld [vmem:[%s1002_s2 + $0x78] sm:$0xff]  ;;  %vm187_vm0 = vcmask 97280   ;;  %vm97_vm1 = vcmask 64512   ;;  %v87_v4 = vld [vmem:[%s1002_s2 + $0x70] sm:$0xff]  ;;  %v86_v7 = vld [vmem:[%s1002_s2 + $0x68] sm:$0xff] }
   0x4   :  { %v72_v2 = vld [vmem:[%s1001_s1 + $0x78] sm:$0xff]  ;;  %587 = vmatpush.xpose.msk.msra.mxu2 %vm187_vm0, %v88_v1  ;;  %v71_v5 = vld [vmem:[%s1001_s1 + $0x70] sm:$0xff]  ;;  %v70_v8 = vld [vmem:[%s1001_s1 + $0x68] sm:$0xff] }
   0x5   :  { %v56_v3 = vld [vmem:[%s1000_s0 + $0x78] sm:$0xff]  ;;  %547 = vmatpush.xpose.msk.msra.mxu0 %vm97_vm1, %v72_v2  ;;  %v55_v6 = vld [vmem:[%s1000_s0 + $0x70] sm:$0xff]  ;;  %v54_v9 = vld [vmem:[%s1000_s0 + $0x68] sm:$0xff] }
   0x6   :  { %567 = vmatpush.xpose.msk.msra.mxu1 %vm187_vm0, %v56_v3  ;;  %v85_v10 = vld [vmem:[%s1002_s2 + $0x60] sm:$0xff] }
   0x7   :  { %v69_v11 = vld [vmem:[%s1001_s1 + $0x60] sm:$0xff] }
   0x8   :  { %588 = vmatpush.xpose.msk.msra.mxu2 %vm187_vm0, %v87_v4  ;;  %v53_v12 = vld [vmem:[%s1000_s0 + $0x60] sm:$0xff] }
   0x9   :  { %548 = vmatpush.xpose.msk.msra.mxu0 %vm97_vm1, %v71_v5 }
   0xa   :  { %568 = vmatpush.xpose.msk.msra.mxu1 %vm187_vm0, %v55_v6 }
   0xc   :  { %589 = vmatpush.xpose.msk.msra.mxu2 %vm187_vm0, %v86_v7 }
   0xd   :  { %549 = vmatpush.xpose.msk.msra.mxu0 %vm97_vm1, %v70_v8 }
   0xe   :  { %569 = vmatpush.xpose.msk.msra.mxu1 %vm187_vm0, %v54_v9 }
   0xf   :  { %18 = vsyncpa [#allocation4], 0  ;;  %v84_v13 = vld [vmem:[%s1002_s2 + $0x58] sm:$0xff]  ;;  %v83_v16 = vld [vmem:[%s1002_s2 + $0x50] sm:$0xff]  ;;  %v648_v37 = vmov 0   ;;  %vm434_vm2 = vcmask 261120  }
  0x10   :  { %590 = vmatpush.xpose.msk.msra.mxu2 %vm187_vm0, %v85_v10  ;;  %v68_v14 = vld [vmem:[%s1001_s1 + $0x58] sm:$0xff]  ;;  %v67_v17 = vld [vmem:[%s1001_s1 + $0x50] sm:$0xff]  ;;  %v82_v19 = vld [vmem:[%s1002_s2 + $0x48] sm:$0xff]  ;;  %616 = vset.pattern.permute.xlu1 %v648_v37  ;;  %s538_s15 = sshll.u32 %s1011_s11, 4  ;;  %s539_s15 = int_to_ptr.hbm [resolvable:$true] %s538_s15 }
  0x11   :  { %550 = vmatpush.xpose.msk.msra.mxu0 %vm97_vm1, %v69_v11  ;;  %v52_v15 = vld [vmem:[%s1000_s0 + $0x58] sm:$0xff]  ;;  %v51_v18 = vld [vmem:[%s1000_s0 + $0x50] sm:$0xff]  ;;  %v66_v20 = vld [vmem:[%s1001_s1 + $0x48] sm:$0xff]  ;;  %615 = vset.pattern.permute.xlu0 %v648_v37 }
  0x12   :  { %570 = vmatpush.xpose.msk.msra.mxu1 %vm187_vm0, %v53_v12  ;;  %v50_v21 = vld [vmem:[%s1000_s0 + $0x48] sm:$0xff]  ;;  %v81_v22 = vld [vmem:[%s1002_s2 + $0x40] sm:$0xff]  ;;  %v80_v25 = vld [vmem:[%s1002_s2 + $0x38] sm:$0xff]  ;;  %617 = vset.pattern.permute.xlu2 %v648_v37 }
  0x13   :  { %v65_v23 = vld [vmem:[%s1001_s1 + $0x40] sm:$0xff]  ;;  %v64_v26 = vld [vmem:[%s1001_s1 + $0x38] sm:$0xff]  ;;  %v79_v28 = vld [vmem:[%s1002_s2 + $0x30] sm:$0xff] }
  0x14   :  { %591 = vmatpush.xpose.msk.msra.mxu2 %vm187_vm0, %v84_v13  ;;  %v49_v24 = vld [vmem:[%s1000_s0 + $0x40] sm:$0xff]  ;;  %v48_v27 = vld [vmem:[%s1000_s0 + $0x38] sm:$0xff]  ;;  %v63_v29 = vld [vmem:[%s1001_s1 + $0x30] sm:$0xff] }
  0x15   :  { %551 = vmatpush.xpose.msk.msra.mxu0 %vm97_vm1, %v68_v14  ;;  %v47_v30 = vld [vmem:[%s1000_s0 + $0x30] sm:$0xff]  ;;  %v78_v31 = vld [vmem:[%s1002_s2 + $0x28] sm:$0xff]  ;;  %v77_v35 = vld [vmem:[%s1002_s2 + $0x20] sm:$0xff] }
  0x16   :  { %571 = vmatpush.xpose.msk.msra.mxu1 %vm187_vm0, %v52_v15  ;;  %v62_v32 = vld [vmem:[%s1001_s1 + $0x28] sm:$0xff]  ;;  %v61_v36 = vld [vmem:[%s1001_s1 + $0x20] sm:$0xff]  ;;  %v76_v39 = vld [vmem:[%s1002_s2 + $0x18] sm:$0xff] }
  0x17   :  { %v46_v33 = vld [vmem:[%s1000_s0 + $0x28] sm:$0xff]  ;;  %v45_v38 = vld [vmem:[%s1000_s0 + $0x20] sm:$0xff]  ;;  %v60_v40 = vld [vmem:[%s1001_s1 + $0x18] sm:$0xff] }
  0x18   :  { %592 = vmatpush.xpose.msk.msra.mxu2 %vm187_vm0, %v83_v16  ;;  %v375_v34 = vld [vmem:[%s1006_s6 + $0x8] sm:$0xff]  ;;  %v44_v41 = vld [vmem:[%s1000_s0 + $0x18] sm:$0xff]  ;;  %v374_v42 = vld [vmem:[%s1006_s6] sm:$0xff] }
  0x19   :  { %552 = vmatpush.xpose.msk.msra.mxu0 %vm97_vm1, %v67_v17  ;;  %385 = vperm.xlu1 %616, %v375_v34   ;;  %v377_v43 = vld [vmem:[%s1006_s6 + $0x18] sm:$0xff]  ;;  %v75_v44 = vld [vmem:[%s1002_s2 + $0x10] sm:$0xff]  ;;  %v74_v47 = vld [vmem:[%s1002_s2 + $0x8] sm:$0xff] }
  0x1a   :  { %572 = vmatpush.xpose.msk.msra.mxu1 %vm187_vm0, %v51_v18  ;;  %v59_v45 = vld [vmem:[%s1001_s1 + $0x10] sm:$0xff]  ;;  %395 = vperm.xlu0 %615, %v377_v43   ;;  %v58_v48 = vld [vmem:[%s1001_s1 + $0x8] sm:$0xff]  ;;  %v410_v51 = vld [vmem:[%s1008_s8] sm:$0xff] }
  0x1b   :  { %v43_v46 = vld [vmem:[%s1000_s0 + $0x10] sm:$0xff]  ;;  %v42_v49 = vld [vmem:[%s1000_s0 + $0x8] sm:$0xff]  ;;  %v73_v52 = vld [vmem:[%s1002_s2] sm:$0xff] }
  0x1c   :  { %593 = vmatpush.xpose.msk.msra.mxu2 %vm187_vm0, %v82_v19  ;;  %v376_v50 = vld [vmem:[%s1006_s6 + $0x10] sm:$0xff]  ;;  %v57_v53 = vld [vmem:[%s1001_s1] sm:$0xff]  ;;  %v411_v58 = vld [vmem:[%s1008_s8 + $0x8] sm:$0xff] }
  0x1d   :  { %553 = vmatpush.xpose.msk.msra.mxu0 %vm97_vm1, %v66_v20  ;;  %v41_v54 = vld [vmem:[%s1000_s0] sm:$0xff]  ;;  %v278_v59 = vld [vmem:[%s1005_s5 + $0x8] sm:$0xff]  ;;  %v279_v62 = vld [vmem:[%s1005_s5 + $0x10] sm:$0xff] }
  0x1e   :  { %573 = vmatpush.xpose.msk.msra.mxu1 %vm187_vm0, %v50_v21  ;;  %v277_v55 = vld [vmem:[%s1005_s5] sm:$0xff]  ;;  %v94_v60 = vld [vmem:[%s1004_s4 + $0x8] sm:$0xff]  ;;  %v95_v63 = vld [vmem:[%s1004_s4 + $0x10] sm:$0xff] }
  0x1f   :  { %v93_v56 = vld [vmem:[%s1004_s4] sm:$0xff]  ;;  %v90_v61 = vld [vmem:[%s1003_s3 + $0x8] sm:$0xff]  ;;  %v91_v0 = vld [vmem:[%s1003_s3 + $0x10] sm:$0xff] }
  0x20   :  { %594 = vmatpush.xpose.msk.msra.mxu2 %vm187_vm0, %v81_v22  ;;  %v89_v57 = vld [vmem:[%s1003_s3] sm:$0xff]  ;;  %v280_v1 = vld [vmem:[%s1005_s5 + $0x18] sm:$0xff] }
  0x21   :  { %554 = vmatpush.xpose.msk.msra.mxu0 %vm97_vm1, %v65_v23  ;;  %380 = vperm.xlu1 %616, %v374_v42   ;;  %v96_v2 = vld [vmem:[%s1004_s4 + $0x18] sm:$0xff]  ;;  %v406_v37 = vld [vmem:[%s1007_s7] sm:$0xff] }
  0x22   :  { %574 = vmatpush.xpose.msk.msra.mxu1 %vm187_vm0, %v49_v24  ;;  %390 = vperm.xlu0 %615, %v376_v50   ;;  %v92_v3 = vld [vmem:[%s1003_s3 + $0x18] sm:$0xff] }
  0x23   :  { %v409_v42 = vld [vmem:[%s1007_s7 + $0x18] sm:$0xff] }
  0x24   :  { %595 = vmatpush.xpose.msk.msra.mxu2 %vm187_vm0, %v80_v25 }
  0x25   :  { %555 = vmatpush.xpose.msk.msra.mxu0 %vm97_vm1, %v64_v26 }
  0x26   :  { %575 = vmatpush.xpose.msk.msra.mxu1 %vm187_vm0, %v48_v27 }
  0x28   :  { %596 = vmatpush.xpose.msk.msra.mxu2 %vm187_vm0, %v79_v28 }
  0x29   :  { %556 = vmatpush.xpose.msk.msra.mxu0 %vm97_vm1, %v63_v29  ;;  %416 = vperm.xlu1 %616, %v410_v51  }
  0x2a   :  { %576 = vmatpush.xpose.msk.msra.mxu1 %vm187_vm0, %v47_v30  ;;  %421 = vperm.xlu0 %615, %v411_v58  }
  0x2c   :  { %597 = vmatpush.xpose.msk.msra.mxu2 %vm187_vm0, %v78_v31 }
  0x2d   :  { %557 = vmatpush.xpose.msk.msra.mxu0 %vm97_vm1, %v62_v32  ;;  %v413_v32 = vld [vmem:[%s1008_s8 + $0x18] sm:$0xff] }
  0x2e   :  { %577 = vmatpush.xpose.msk.msra.mxu1 %vm187_vm0, %v46_v33  ;;  %431 = vperm.xlu2 %617, %v413_v32  }
  0x30   :  { %598 = vmatpush.xpose.msk.msra.mxu2 %vm187_vm0, %v77_v35 }
  0x31   :  { %558 = vmatpush.xpose.msk.msra.mxu0 %vm97_vm1, %v61_v36 }
  0x32   :  { %578 = vmatpush.xpose.msk.msra.mxu1 %vm187_vm0, %v45_v38  ;;  %v412_v38 = vld [vmem:[%s1008_s8 + $0x10] sm:$0xff] }
  0x34   :  { %599 = vmatpush.xpose.msk.msra.mxu2 %vm187_vm0, %v76_v39  ;;  %v407_v39 = vld [vmem:[%s1007_s7 + $0x8] sm:$0xff] }
  0x35   :  { %559 = vmatpush.xpose.msk.msra.mxu0 %vm97_vm1, %v60_v40  ;;  %v481_v40 = vld [vmem:[#allocation2] sm:$0x1] }
  0x36   :  { %579 = vmatpush.xpose.msk.msra.mxu1 %vm187_vm0, %v44_v41  ;;  %426 = vperm.xlu2 %617, %v412_v38   ;;  %v408_v41 = vld [vmem:[%s1007_s7 + $0x10] sm:$0xff] }
  0x38   :  { %600 = vmatpush.xpose.msk.msra.mxu2 %vm187_vm0, %v75_v44 }
  0x39   :  { %560 = vmatpush.xpose.msk.msra.mxu0 %vm97_vm1, %v59_v45 }
  0x3a   :  { %580 = vmatpush.xpose.msk.msra.mxu1 %vm187_vm0, %v43_v46 }
  0x3c   :  { %601 = vmatpush.xpose.msk.msra.mxu2 %vm187_vm0, %v74_v47 }
  0x3d   :  { %561 = vmatpush.xpose.msk.msra.mxu0 %vm97_vm1, %v58_v48 }
  0x3e   :  { %581 = vmatpush.xpose.msk.msra.mxu1 %vm187_vm0, %v42_v49  ;;  %484 = vperm.xlu2 %617, %v481_v40  }
  0x40   :  { %602 = vmatpush.xpose.msk.msra.mxu2 %vm187_vm0, %v73_v52 }
  0x41   :  { %562 = vmatpush.xpose.msk.msra.mxu0 %vm97_vm1, %v57_v53 }
  0x42   :  { %582 = vmatpush.xpose.msk.msra.mxu1 %vm187_vm0, %v41_v54 }
  0x43   :  { %603 = vmatmul.msk.f32.vlgmr.msra.gmra.mxu2 %vm187_vm0, %v277_v55 }
  0x44   :  { %563 = vmatmul.msk.f32.vlgmr.msra.gmra.mxu0 %vm97_vm1, %v93_v56 }
  0x45   :  { %583 = vmatmul.msk.f32.vlgmr.msra.gmra.mxu1 %vm187_vm0, %v89_v57 }
  0x4b   :  { %604 = vmatmul.msk.f32.gmra.mxu2 %vm187_vm0, %v278_v59  ;;  %v480_v59 = vld [vmem:[%s1009_s9] sm:$0x1]  ;;  %s649_s9 = smov [#allocation3]  }
  0x4c   :  { %564 = vmatmul.msk.f32.gmra.mxu0 %vm97_vm1, %v94_v60  ;;  %s536_s12 = sshll.u32 %s649_s9, 4  ;;  %s537_s12 = int_to_ptr.vmem [resolvable:$true] %s536_s12 }
  0x4d   :  { %584 = vmatmul.msk.f32.gmra.mxu1 %vm187_vm0, %v90_v61 }
  0x53   :  { %605 = vmatmul.msk.f32.gmra.mxu2 %vm187_vm0, %v279_v62 }
  0x54   :  { %565 = vmatmul.msk.f32.gmra.mxu0 %vm97_vm1, %v95_v63 }
  0x55   :  { %585 = vmatmul.msk.f32.gmra.mxu1 %vm187_vm0, %v91_v0 }
  0x5b   :  { %606 = vmatmul.msk.f32.gmra.mxu2 %vm187_vm0, %v280_v1 }
  0x5c   :  { %566 = vmatmul.msk.f32.gmra.mxu0 %vm97_vm1, %v96_v2 }
  0x5d   :  { %586 = vmatmul.msk.f32.gmra.mxu1 %vm187_vm0, %v92_v3 }
  0x88   :  { %v432_v45 = vpop.permute.xlu2 %431 }
  0x8b   :  { %v386_v14 = vpop.permute.xlu1 %385 }
  0x8c   :  { %v396_v12 = vpop.permute.xlu0 %395 }
  0x90   :  { %v427_v47 = vpop.permute.xlu2 %426 }
  0x93   :  { %v381_v29 = vpop.permute.xlu1 %380 }
  0x94   :  { %v391_v25 = vpop.permute.xlu0 %390 }
  0x98   :  { %v485_v60 = vpop.permute.xlu2 %484 }
  0x99   :  { %v487_v61 = vperm.slane %v485_v60, 0 }
  0x9b   :  { %v417_v54 = vpop.permute.xlu1 %416 }
  0x9c   :  { %v422_v51 = vpop.permute.xlu0 %421 }
  0xc1   :  { %v175_v4 = vpop.f32.mrf.mxu0 }
  0xc2   :  { %v265_v5 = vpop.f32.mrf.mxu1 }
  0xc3   :  { %v266_v20 = vadd.f32 %v265_v5, %v175_v4 }
  0xc6   :  { %v358_v6 = vpop.f32.mrf.mxu2 }
  0xc7   :  { %v370_v26 = vadd.f32 %v358_v6, %v266_v20 }
  0xc9   :  { %v178_v7 = vpop.f32.mrf.mxu0  ;;  %v398_v33 = vadd.f32 %v381_v29, %v370_v26 }
  0xca   :  { %v268_v8 = vpop.f32.mrf.mxu1 }
  0xcb   :  { %v269_v18 = vadd.f32 %v268_v8, %v178_v7  ;;  %v402_v36 = vmax.f32 %v398_v33, 0.0 }
  0xce   :  { %v361_v9 = vpop.f32.mrf.mxu2 }
  0xcf   :  { %v371_v23 = vadd.f32 %v361_v9, %v269_v18 }
  0xd1   :  { %v181_v10 = vpop.f32.mrf.mxu0  ;;  %v399_v31 = vadd.f32 %v386_v14, %v371_v23 }
  0xd2   :  { %v271_v11 = vpop.f32.mrf.mxu1 }
  0xd3   :  { %v272_v16 = vadd.f32 %v271_v11, %v181_v10  ;;  %v403_v35 = vmax.f32 %v399_v31, 0.0 }
  0xd6   :  { %v364_v13 = vpop.f32.mrf.mxu2 }
  0xd7   :  { %v372_v21 = vadd.f32 %v364_v13, %v272_v16 }
  0xd9   :  { %v184_v15 = vpop.f32.mrf.mxu0  ;;  %v400_v28 = vadd.f32 %v391_v25, %v372_v21 }
  0xda   :  { %v274_v17 = vpop.f32.mrf.mxu1 }
  0xdb   :  { %v275_v19 = vadd.f32 %v274_v17, %v184_v15  ;;  %v404_v34 = vmax.f32 %v400_v28, 0.0 }
  0xde   :  { %v367_v22 = vpop.f32.mrf.mxu2 }
  0xdf   :  { %v373_v24 = vadd.f32 %v367_v22, %v275_v19 }
  0xe1   :  { %v401_v27 = vadd.f32 %v396_v12, %v373_v24 }
  0xe3   :  { %v405_v30 = vmax.f32 %v401_v27, 0.0 }
  0xe5   :  { %459 = vmatpush.msra.mxu3 %v405_v30 }
  0xe7   :  { %460 = vmatpush.msra.mxu3 %v404_v34 }
  0xe9   :  { %461 = vmatpush.msra.mxu3 %v403_v35 }
  0xeb   :  { %462 = vmatpush.msra.mxu3 %v402_v36 }
  0xec   :  { %607 = vmatmul.msk.f32.vlgmr.msra.gmra.mxu3 %vm434_vm2, %v406_v37 }
  0xf4   :  { %608 = vmatmul.msk.f32.gmra.mxu3 %vm434_vm2, %v407_v39 }
  0xfc   :  { %609 = vmatmul.msk.f32.gmra.mxu3 %vm434_vm2, %v408_v41 }
 0x104   :  { %610 = vmatmul.msk.f32.gmra.mxu3 %vm434_vm2, %v409_v42 }
 0x16f   :  { %v464_v43 = vpop.f32.mrf.mxu3 }
 0x170   :  { %v465_v55 = vadd.f32 %v464_v43, %v417_v54 }
 0x172   :  { %v476_v58 = vmax.f32 %v465_v55, 0.0 }
 0x177   :  { %v467_v44 = vpop.f32.mrf.mxu3 }
 0x178   :  { %v468_v52 = vadd.f32 %v467_v44, %v422_v51 }
 0x17a   :  { %v477_v57 = vmax.f32 %v468_v52, 0.0 }
 0x17f   :  { %v470_v46 = vpop.f32.mrf.mxu3 }
 0x180   :  { %v471_v49 = vadd.f32 %v470_v46, %v427_v47 }
 0x182   :  { %v478_v56 = vmax.f32 %v471_v49, 0.0 }
 0x187   :  { %v473_v48 = vpop.f32.mrf.mxu3 }
 0x188   :  { %v474_v50 = vadd.f32 %v473_v48, %v432_v45 }
 0x18a   :  { %v479_v53 = vmax.f32 %v474_v50, 0.0 }
 0x18c   :  { %503 = vmatpush.msrb.mxu3 %v479_v53 }
 0x18e   :  { %504 = vmatpush.msrb.mxu3 %v478_v56 }
 0x190   :  { %505 = vmatpush.msrb.mxu3 %v477_v57 }
 0x192   :  { %506 = vmatpush.msrb.mxu3 %v476_v58 }
 0x193   :  { %611 = vmatmul.msk.f32.vlgmr.msrb.gmra.mxu3 %vm434_vm2, %v480_v59 }
 0x216   :  { %v508_v62 = vpop.f32.mrf.mxu3 }
 0x217   :  { %v509_v63 = vadd.f32 %v508_v62, %v487_v61 }
 0x219   :  { %v612_v0 = vmul.f32 -1.442695, %v509_v63 }
 0x21b   :  { %618 = vpow2.f32 %v612_v0 }
 0x221   :  { %v619_v1 = vpop.eup %618 }
 0x222   :  { %v514_v2 = vadd.f32 1.0, %v619_v1 }
 0x224   :  { %620 = vrcp.f32 %v514_v2  ;;  %v526_v6 = vand.u32 2147483648, %v514_v2  ;;  %v524_v8 = vand.u32 2147483647, %v514_v2  ;;  %vm520_vm4 = vweird.f32 %v514_v2 }
 0x226   :  { %v527_v10 = vor.u32 1.1754944e-38, %v526_v6  ;;  %vm525_vm6 = vcmp.eq.f32.partialorder %v524_v8, 8.507059e+37 }
 0x22a   :  { %v621_v3 = vpop.eup %620 }
 0x22b   :  { %v516_v4 = vmul.f32 %v621_v3, %v514_v2  ;;  %vm521_vm3 = vweird.f32 %v621_v3 }
 0x22c   :  { %vm522_vm5 = vmor %vm520_vm4, %vm521_vm3 }
 0x22d   :  { %v517_v5 = vsub.f32 1.0, %v516_v4 }
 0x22f   :  { %v518_v7 = vmul.f32 %v621_v3, %v517_v5 }
 0x231   :  { %v519_v9 = vadd.f32 %v621_v3, %v518_v7 }
 0x233   :  { %v523_v11 = vsel %vm522_vm5, %v621_v3, %v519_v9 }
 0x234   :  { %v528_v12 = vsel %vm525_vm6, %v527_v10, %v523_v11 }
 0x235   :  { %530 = vst [vmem:[#allocation3] sm:$0x1] %v528_v12 }
 0x236   :  { %541 = dma.vmem_to_hbm [thread:$0]  %s537_s12, 16, %s539_s15, [#allocation4]  }
 0x237   :  { %646 = dma.done.wait [#allocation4], 16  }
 0x238   :  { %647 = vsyncadd [#allocation4], 4294967280 }
 0x239   :  { %546 = vsyncpa [#allocation4], 1 }

</bundles_post_ra>
